<compile_context>
chip_gen: v5e
topology: v5e:2x2
jax: 0.10.0
libtpu: 0.0.40
codegen_flags: <defaults>
</compile_context>

<pallas_src>
import jax
import jax.numpy as jnp
from jax.experimental import pallas as pl
from jax.experimental.pallas import tpu as pltpu


def _round_up(x, m):
    return ((x + m - 1) // m) * m


# ---------------------------------------------------------------------------
# Hoisted, batched matmul + bias kernel (used for the x@W_ih prepass and the
# vocabulary projection).  Output tiles are lane-dense (tm x tn, tn >= 128).
# ---------------------------------------------------------------------------
def _matmul_bias_kernel(a_ref, w_ref, b_ref, o_ref):
    o_ref[...] = (
        jnp.dot(a_ref[...], w_ref[...], preferred_element_type=jnp.float32)
        + b_ref[...]
    ).astype(o_ref.dtype)


def pallas_matmul_bias(a, w, bias, *, tm=128, tn=256):
    """(M,K) @ (K,N) + (1,N) -> (M,N) float32, tiled over M and N (parallel)."""
    M, K = a.shape
    K2, N = w.shape
    assert K == K2
    Mp = _round_up(M, tm)
    Np = _round_up(N, tn)
    Kp = _round_up(K, 128)

    a_p = jnp.pad(a, ((0, Mp - M), (0, Kp - K)))
    w_p = jnp.pad(w, ((0, Kp - K), (0, Np - N)))
    b_p = jnp.pad(bias.astype(jnp.float32), ((0, 0), (0, Np - N)))

    out = pl.pallas_call(
        _matmul_bias_kernel,
        out_shape=jax.ShapeDtypeStruct((Mp, Np), jnp.float32),
        grid=(Mp // tm, Np // tn),
        in_specs=[
            pl.BlockSpec((tm, Kp), lambda i, j: (i, 0)),
            pl.BlockSpec((Kp, tn), lambda i, j: (0, j)),
            pl.BlockSpec((1, tn), lambda i, j: (0, j)),
        ],
        out_specs=pl.BlockSpec((tm, tn), lambda i, j: (i, j)),
        compiler_params=pltpu.CompilerParams(
            dimension_semantics=("parallel", "parallel")),
    )(a_p, w_p, b_p)
    return out[:M, :N]


# ---------------------------------------------------------------------------
# LSTM recurrence: one pallas_call, fori_loop over timesteps, h/c in VMEM.
# gx = x@W_ih^T + b is precomputed; only h_prev @ W_hh^T remains per step.
# ---------------------------------------------------------------------------
def _lstm_recurrence_kernel(gx_ref, whh_ref, hs_ref, h_sc, c_sc):
    n_steps = gx_ref.shape[0]
    H = h_sc.shape[1]

    h_sc[...] = jnp.zeros_like(h_sc)
    c_sc[...] = jnp.zeros_like(c_sc)

    def step(t, carry):
        # (B, 4H) = precomputed gate inputs + recurrent contribution (f32 acc).
        gates = gx_ref[t] + jnp.dot(
            h_sc[...].astype(whh_ref.dtype), whh_ref[...],
            preferred_element_type=jnp.float32)
        # H is a multiple of 128 -> each gate slice is a full lane-aligned slab.
        i_g = jax.nn.sigmoid(gates[:, 0 * H:1 * H])
        f_g = jax.nn.sigmoid(gates[:, 1 * H:2 * H])
        g_g = jnp.tanh(gates[:, 2 * H:3 * H])
        o_g = jax.nn.sigmoid(gates[:, 3 * H:4 * H])

        c_new = f_g * c_sc[...] + i_g * g_g
        h_new = o_g * jnp.tanh(c_new)

        c_sc[...] = c_new
        h_sc[...] = h_new
        hs_ref[t] = h_new.astype(hs_ref.dtype)
        return carry

    jax.lax.fori_loop(0, n_steps, step, 0, unroll=n_steps <= 16)


# ---------------------------------------------------------------------------
# Wrapper: embedding glue, padding/re-packing, 3 pallas_calls.
# ---------------------------------------------------------------------------
def decoder_rnn_forward(features, captions, params):
    """features: (B, E) float32, captions: (B, L) int32. Returns (B, L, V)."""
    B, E = features.shape
    H = params["whh_t"].shape[0]
    V = params["wfc_t"].shape[1]

    B_pad = _round_up(max(B, 8), 8)
    E_pad = _round_up(E, 128)
    H_pad = _round_up(H, 128)

    # --- re-pack weights per-gate, zero-pad to lane-aligned sizes, cast bf16 ---
    wih = params["wih_t"].reshape(E, 4, H)
    wih = jnp.pad(wih, ((0, E_pad - E), (0, 0), (0, H_pad - H)))
    wih = wih.reshape(E_pad, 4 * H_pad).astype(jnp.bfloat16)

    whh = params["whh_t"].reshape(H, 4, H)
    whh = jnp.pad(whh, ((0, H_pad - H), (0, 0), (0, H_pad - H)))
    whh = whh.reshape(H_pad, 4 * H_pad).astype(jnp.bfloat16)

    b = params["b"].reshape(1, 4, H)
    b = jnp.pad(b, ((0, 0), (0, 0), (0, H_pad - H))).reshape(1, 4 * H_pad)  # f32

    wfc = jnp.pad(params["wfc_t"], ((0, H_pad - H), (0, 0))).astype(jnp.bfloat16)
    bfc = params["bfc"]  # (1, V) f32; N-padding handled inside pallas_matmul_bias

    # --- glue: embedding lookup of captions[:, :-1], prepend image features ---
    cap_embed = jnp.take(params["embed"], captions[:, :-1], axis=0)      # (B,L-1,E)
    x = jnp.concatenate([features[:, None, :], cap_embed], axis=1)       # (B, T, E)
    T = x.shape[1]
    x_seq = jnp.transpose(x, (1, 0, 2)).astype(jnp.float32)              # (T, B, E)
    x_seq = jnp.pad(x_seq, ((0, 0), (0, B_pad - B), (0, E_pad - E)))     # (T,Bp,Ep)

    # --- hoisted prepass: gate inputs for ALL timesteps in one big matmul ---
    gx = pallas_matmul_bias(
        x_seq.reshape(T * B_pad, E_pad).astype(jnp.bfloat16), wih, b)    # (T*Bp,4Hp)
    gx = gx.reshape(T, B_pad, 4 * H_pad)

    # --- sequential recurrence: single invocation, VMEM-resident h/c ---
    # (Constant-index weight blocks are tiny here; at real H consider
    #  pipeline_mode=pl.Buffered(1) / scratch-loaded weights to save VMEM.)
    hs = pl.pallas_call(
        _lstm_recurrence_kernel,
        out_shape=jax.ShapeDtypeStruct((T, B_pad, H_pad), jnp.bfloat16),
        grid=(1,),
        in_specs=[
            pl.BlockSpec((T, B_pad, 4 * H_pad), lambda i: (0, 0, 0)),
            pl.BlockSpec((H_pad, 4 * H_pad), lambda i: (0, 0)),
        ],
        out_specs=pl.BlockSpec((T, B_pad, H_pad), lambda i: (0, 0, 0)),
        scratch_shapes=[pltpu.VMEM((B_pad, H_pad), jnp.float32),
                        pltpu.VMEM((B_pad, H_pad), jnp.float32)],
        compiler_params=pltpu.CompilerParams(
            dimension_semantics=("arbitrary",)),
    )(gx, whh)

    # --- hoisted FC: one big (T*Bp, H) @ (H, V) matmul, lane-dense output ---
    logits = pallas_matmul_bias(hs.reshape(T * B_pad, H_pad), wfc, bfc)  # (T*Bp,V)
    logits = logits.reshape(T, B_pad, V)[:, :B, :]                       # (T, B, V)
    return jnp.transpose(logits, (1, 0, 2))                              # (B, T, V)


# ---------------------------------------------------------------------------
# Pure-JAX f32 reference (lax.scan LSTM) for correctness check.
# ---------------------------------------------------------------------------
def _reference_forward(features, captions, params):
    embed_tbl, wih_t, whh_t, b = (params["embed"], params["wih_t"],
                                  params["whh_t"], params["b"])
    wfc_t, bfc = params["wfc_t"], params["bfc"]
    B, E = features.shape
    H = whh_t.shape[0]

    cap_embed = jnp.take(embed_tbl, captions[:, :-1], axis=0)
    x = jnp.concatenate([features[:, None, :], cap_embed], axis=1)  # (B, T, E)
    x_seq = jnp.transpose(x, (1, 0, 2))                             # (T, B, E)

    def step(carry, xt):
        h, c = carry
        gates = xt @ wih_t + h @ whh_t + b
        i = jax.nn.sigmoid(gates[:, 0 * H:1 * H])
        f = jax.nn.sigmoid(gates[:, 1 * H:2 * H])
        g = jnp.tanh(gates[:, 2 * H:3 * H])
        o = jax.nn.sigmoid(gates[:, 3 * H:4 * H])
        c = f * c + i * g
        h = o * jnp.tanh(c)
        return (h, c), h

    h0 = jnp.zeros((B, H), jnp.float32)
    (_, _), hs = jax.lax.scan(step, (h0, h0), x_seq)   # (T, B, H)
    logits = hs @ wfc_t + bfc                          # (T, B, V)
    return jnp.transpose(logits, (1, 0, 2))


def init_params(key, embed_size, hidden_size, vocab_size):
    ks = jax.random.split(key, 7)
    s = 0.1
    return {
        "embed": s * jax.random.normal(ks[0], (vocab_size, embed_size), jnp.float32),
        "wih_t": s * jax.random.normal(ks[1], (embed_size, 4 * hidden_size), jnp.float32),
        "whh_t": s * jax.random.normal(ks[2], (hidden_size, 4 * hidden_size), jnp.float32),
        # b = b_ih + b_hh combined
        "b": s * jax.random.normal(ks[3], (1, 4 * hidden_size), jnp.float32),
        "wfc_t": s * jax.random.normal(ks[4], (hidden_size, vocab_size), jnp.float32),
        "bfc": s * jax.random.normal(ks[5], (1, vocab_size), jnp.float32),
    }


if __name__ == "__main__":
    EMBED, HIDDEN, VOCAB = 32, 32, 48
    B, CAP_LEN = 2, 8

    key = jax.random.PRNGKey(0)
    kp, kf, kc = jax.random.split(key, 3)
    params = init_params(kp, EMBED, HIDDEN, VOCAB)

    features = jax.random.normal(kf, (B, EMBED), jnp.float32)
    captions = jax.random.randint(kc, (B, CAP_LEN), 0, VOCAB, dtype=jnp.int32)

    out = decoder_rnn_forward(features, captions, params)
    out = jax.block_until_ready(out)

    ref = jax.block_until_ready(_reference_forward(features, captions, params))
    assert out.shape == (B, CAP_LEN, VOCAB), out.shape
    # bf16 weights/activations in the kernels -> loosened tolerance vs f32 ref.
    assert jnp.allclose(out, ref, atol=3e-2, rtol=3e-2), "mismatch vs reference"

    print("KERNEL_OK")
</pallas_src>

<mosaic_0001>
module attributes {stable_mosaic.version = 11 : i64} {
  func.func @_matmul_bias_kernel(%arg0: i32, %arg1: i32, %arg2: memref<128x128xbf16, #tpu.memory_space<vmem>>, %arg3: memref<128x256xbf16, #tpu.memory_space<vmem>>, %arg4: memref<1x256xf32, #tpu.memory_space<vmem>>, %arg5: memref<128x256xf32, #tpu.memory_space<vmem>>) attributes {dimension_semantics = [#tpu.dimension_semantics<parallel>, #tpu.dimension_semantics<parallel>], iteration_bounds = array<i64: 1, 2>, scalar_prefetch = 0 : i64, scratch_operands = 0 : i64, tpu.core_type = #tpu.core_type<tc>, window_params = [{transform_indices = @transform_0, window_bounds = array<i64: 128, 128>}, {transform_indices = @transform_1, window_bounds = array<i64: 128, 256>}, {transform_indices = @transform_2, window_bounds = array<i64: 1, 256>}, {transform_indices = @transform_3, window_bounds = array<i64: 128, 256>}]} {
    %c0 = arith.constant 0 : index
    %c0_0 = arith.constant 0 : index
    %0 = vector.load %arg2[%c0, %c0_0] : memref<128x128xbf16, #tpu.memory_space<vmem>>, vector<128x128xbf16>
    %c0_1 = arith.constant 0 : index
    %c0_2 = arith.constant 0 : index
    %1 = vector.load %arg3[%c0_1, %c0_2] : memref<128x256xbf16, #tpu.memory_space<vmem>>, vector<128x256xbf16>
    %cst = arith.constant dense<0.000000e+00> : vector<128x256xf32>
    %2 = tpu.matmul %0, %1, %cst {dimension_numbers = #tpu.dot_dimension_numbers<[1], [0], [0], [1], [0, 0, 1, 1], [], []>} : vector<128x128xbf16>, vector<128x256xbf16>, vector<128x256xf32> -> vector<128x256xf32>
    %c0_3 = arith.constant 0 : index
    %c0_4 = arith.constant 0 : index
    %3 = vector.load %arg4[%c0_3, %c0_4] : memref<1x256xf32, #tpu.memory_space<vmem>>, vector<1x256xf32>
    %4 = vector.broadcast %3 : vector<1x256xf32> to vector<128x256xf32>
    %5 = arith.addf %2, %4 : vector<128x256xf32>
    %c0_5 = arith.constant 0 : index
    %c0_6 = arith.constant 0 : index
    %6 = vector.load %arg5[%c0_5, %c0_6] : memref<128x256xf32, #tpu.memory_space<vmem>>, vector<128x256xf32>
    tpu.vector_store %arg5[%c0_5, %c0_6], %5 {strides = array<i32>} : memref<128x256xf32, #tpu.memory_space<vmem>>, vector<128x256xf32>,
    return
  }
  func.func @transform_0(%arg0: i32, %arg1: i32) -> (i32, i32) {
    %c0_i32 = arith.constant 0 : i32
    %c0_i32_0 = arith.constant 0 : i32
    return %arg0, %c0_i32 : i32, i32
  }
  func.func @transform_1(%arg0: i32, %arg1: i32) -> (i32, i32) {
    %c0_i32 = arith.constant 0 : i32
    %c0_i32_0 = arith.constant 0 : i32
    return %c0_i32, %arg1 : i32, i32
  }
  func.func @transform_2(%arg0: i32, %arg1: i32) -> (i32, i32) {
    %c0_i32 = arith.constant 0 : i32
    %c0_i32_0 = arith.constant 0 : i32
    return %c0_i32, %arg1 : i32, i32
  }
  func.func @transform_3(%arg0: i32, %arg1: i32) -> (i32, i32) {
    %c0_i32 = arith.constant 0 : i32
    return %arg0, %arg1 : i32, i32
  }
}

</mosaic_0001>

<bundles_post_ra>
// kernel: tpu_custom_call.1
= control target key start
LH: loop header
LB: loop body
LE: loop exit
PB: predicated region body
PF: predicated region fallthrough
CT: control target
= control target key end

     0   :  { %s1434_s0 = inlined_call_operand.hbm [shape: bf16[128,128], index: 0, kind: input, shape index: {}]   ;;  %s1435_s1 = inlined_call_operand.hbm [shape: bf16[128,512], index: 1, kind: input, shape index: {}]   ;;  %s1436_s2 = inlined_call_operand.hbm [shape: f32[1,512], index: 2, kind: input, shape index: {}]   ;;  %s1437_s3 = inlined_call_operand.hbm [shape: f32[128,512], index: 3, kind: output, shape index: {}]  }
   0x1   :  { %1438 = sst [smem:[#allocation12_spill]] %s1434_s0 }
   0x2   :  { %1439 = sst [smem:[#allocation13_spill]] %s1435_s1 }
   0x3   :  { %8 = vsyncpa [#allocation3], 0 }
   0x4   :  { %9 = vsyncpa [#allocation6], 0 }
   0x5   :  { %11 = vsyncpa [#allocation6 + $0x1], 0 }
   0x6   :  { %12 = vsyncpa [#allocation4], 0 }
   0x7   :  { %14 = vsyncpa [#allocation4 + $0x1], 0  ;;  %s1155_s12 = smov 0   ;;  %s1157_s13 = smov 0  }
   0x8   :  { %s1159_s14 = smov 0   ;;  %s1161_s15 = smov 0  }
   0x9   :  { %s1163_s16 = smov 0   ;;  %s1165_s17 = smov 0  }
   0xa LB: > { %s29_s18 = sadd.s32 1, %s1120_s16  ;;  %s65_s19 = sadd.s32 1, %s1112_s14  ;;  %s1124_s17 = sphi %s1165_s17, %s20_s17   ;;  %s1120_s16 = sphi %s1163_s16, %s1452_s16   ;;  %s1116_s15 = sphi %s1161_s15, %s1451_s15   ;;  %s1112_s14 = sphi %s1159_s14, %s1450_s14   ;;  %s1108_s13 = sphi %s1157_s13, %s1449_s13   ;;  %s1104_s12 = sphi %s1155_s12, %s1448_s12  }
   0xb   : > { %p30_p0 = scmp.ge.s32.totalorder %s29_s18, 2  ;;  %p72_p1 = scmp.ne.s32.totalorder %s1112_s14, %s1108_s13 }
   0xc   : > { %p73_p2 = scmp.eq.s32.totalorder %s1124_s17, 0  ;;  %p708_p3 = scmp.ge.s32.totalorder %s1124_s17, 2 }
   0xd   : > { %s1454_s18 = smov (%p30_p0, %s29_s18), 0  ;;  %p888_p5 = scmp.lt.s32.totalorder %s1124_s17, 2 }
   0xe   : > { %p1196_p4 = por %p73_p2, %p72_p1  ;;  %s62_s21 = ssub.s32 %s1120_s16, %s1454_s18 }
   0xf   : > { %s173_s22 = sand.u32 1, %s1124_s17   ;;  %p63_p6 = scmp.eq.s32.totalorder %s62_s21, 0 }
  0x10   : > { %s175_s23 = sand.u32 1, %s1112_s14   ;;  %s820_s24 = sshll.u32 %s1120_s16, 3 }
  0x11   : > { %s1207_s25 = scalar_select %p63_p6, %s1112_s14, %s65_s19  }
  0x12   : > { %s709_s26 = sshll.u32 %s175_s23, 7  ;;  %s1441_s1 = sld [smem:[#allocation13_spill]] }
  0x13   : > { %s177_s4 = scalar_lea.vmem [#allocation5], %s709_s26  ;;  %p1218_p7 = pnand %p888_p5, %p1196_p4 }
  0x14   : > { %s185_s5 = sshll.u32 %s177_s4, 4  ;;  %s1222_s7 = scalar_lea.sflag [#allocation6], %s173_s22  ;;  %s186_s5 = int_to_ptr.vmem [resolvable:$true] %s185_s5 }
  0x15   : > { %s1126_s8 = smov 256   ;;  %s1127_s9 = smov 128  }
  0x16   : > { %s1128_s10 = smov 8   ;;  %s1228_s11 = sadd.s32 4294967295, %s1124_s17  }
  0x17   : > { %s705_s19 = sadd.s32 4294967294, %s1124_s17   ;;  %p78_p8 = scmp.ne.s32.totalorder %s1108_s13, %s1104_s12 }
  0x18   : > { %s182_s29 = scalar_lea.hbm %s1441_s1, %s820_s24  ;;  %p79_p9 = scmp.eq.s32.totalorder %s1228_s11, 0 }
  0x19   : > { %s183_s30 = sshll.u32 %s182_s29, 4  ;;  %p130_p10 = scmp.eq.s32.totalorder %s1228_s11, 1  ;;  %s184_s30 = int_to_ptr.hbm [resolvable:$true] %s183_s30 }
  0x1a   : > { %879 = dma.hbm_to_vmem [thread:$0]  (!%p1218_p7), %s184_s30, 2048, %s186_s5, %s1222_s7, %s1126_s8, %s1127_s9, %s1128_s10  }
  0x1b   : > { %p136_p11 = scmp.eq.s32.totalorder %s705_s19, 1  ;;  %p1237_p12 = por %p79_p9, %p78_p8 }
  0x1c   : > { %p706_p13 = scmp.ge.s32.totalorder %s1124_s17, 1  ;;  %p1245_p0 = por %p130_p10, %p72_p1 }
  0x1d   : > { %p1249_p2 = por %p136_p11, %p78_p8  ;;  %p143_p4 = scmp.lt.s32.totalorder %s1124_s17, 3 }
  0x1e   : > { %s1446_s0 = sld [smem:[#allocation12_spill]]  ;;  %s1129_s29 = smov [#allocation2]  }
  0x1f   : > { %p1257_p5 = pnand %p706_p13, %p143_p4  ;;  %s159_s30 = sshll.u32 %s1129_s29, 4  ;;  %s160_s30 = int_to_ptr.vmem [resolvable:$true] %s159_s30 }
  0x20   : > { %s712_s4 = sshll.u32 %s175_s23, 1  ;;  %s713_s5 = sshll.u32 %s1120_s16, 1 }
  0x21   : > { %p872_p1 = pneg %p1257_p5  ;;  %s199_s8 = scalar_lea.vmem [#allocation7], %s712_s4 }
  0x22   : > { %s207_s9 = sshll.u32 %s199_s8, 4  ;;  %s203_s24 = scalar_lea.hbm %s1436_s2, %s713_s5  ;;  %s208_s9 = int_to_ptr.vmem [resolvable:$true] %s207_s9 }
  0x23   : > { %p873_p6 = pnand %p872_p1, %p79_p9  ;;  %s1130_s26 = smov 64  }
  0x24   : > { %s157_s27 = sshll.u32 %s1446_s0, 4  ;;  %s1131_s0 = smov 4   ;;  %s158_s27 = int_to_ptr.hbm [resolvable:$true] %s157_s27 }
  0x25   : > { %875 = dma.hbm_to_vmem [thread:$0]  (!%p873_p6), %s158_s27, 1024, %s160_s30, [#allocation3], %s1130_s26, %s1130_s26, %s1131_s0  }
  0x26   : > { %s205_s1 = sshll.u32 %s203_s24, 4  ;;  %216 = sbr.rel (%p1257_p5) target bundleno = 278 (0x116), region = 32  ;;  %s206_s1 = int_to_ptr.hbm [resolvable:$true] %s205_s1 }
  0x27   : > { %882 = dma.hbm_to_vmem [thread:$0]  (!%p1218_p7), %s206_s1, 32, %s208_s9, %s1222_s7  }
  0x2b   : > { %1091 = dma.done.wait (%p79_p9), [#allocation3], 1024  }
  0x2c   : > { %1093 = vsyncadd (%p79_p9), [#allocation3], 4294966272  ;;  %s223_s23 = sand.u32 1, %s1228_s11   ;;  %s1282_s29 = sand.u32 1, %s1108_s13  }
  0x2d   : > { %s716_s0 = sshll.u32 %s1282_s29, 7  ;;  %s224_s27 = scalar_lea.sflag [#allocation6], %s223_s23 }
  0x2e   : > { %s1285_s6 = scalar_lea.vmem [#allocation5], %s716_s0 }
  0x2f   : > { %1095 = dma.done.wait (%p1237_p12), %s224_s27, 2080  }
  0x30   : > { %1097 = vsyncadd (%p1237_p12), %s224_s27, 4294965216  ;;  %v809_v0 = vld [vmem:[%s1285_s6 + $0x70] sm:$0xf]  ;;  %v844_v1 = vld [vmem:[%s1285_s6 + $0x74] sm:$0xf0]  ;;  %s717_s1 = sshll.u32 %s1282_s29, 1 }
  0x31   : > { %v843_v2 = vld [vmem:[%s1285_s6 + $0x74] sm:$0xf]  ;;  %v810_v3 = vor.u32 %v844_v1, %v809_v0  ;;  %v811_v4 = vld [vmem:[%s1285_s6 + $0x78] sm:$0xf0]  ;;  %v801_v5 = vld [vmem:[%s1285_s6 + $0x60] sm:$0xf] }
  0x32   : > { %v842_v6 = vld [vmem:[%s1285_s6 + $0x64] sm:$0xf0]  ;;  %v814_v7 = vor.u32 %v843_v2, %v811_v4  ;;  %v841_v8 = vld [vmem:[%s1285_s6 + $0x64] sm:$0xf]  ;;  %v803_v9 = vld [vmem:[%s1285_s6 + $0x68] sm:$0xf0] }
  0x33   : > { %437 = vmatpush.bf16.msra.mxu0 %v810_v3  ;;  %846 = vmatpush.bf16.msra.mxu2 %v810_v3  ;;  %v802_v10 = vor.u32 %v842_v6, %v801_v5  ;;  %v806_v11 = vor.u32 %v841_v8, %v803_v9  ;;  %v793_v12 = vld [vmem:[%s1285_s6 + $0x50] sm:$0xf]  ;;  %v840_v13 = vld [vmem:[%s1285_s6 + $0x54] sm:$0xf0]  ;;  %v839_v14 = vld [vmem:[%s1285_s6 + $0x54] sm:$0xf] }
  0x34   : > { %486 = vmatpush.bf16.msra.mxu1 %v814_v7  ;;  %854 = vmatpush.bf16.msra.mxu3 %v814_v7  ;;  %v795_v15 = vld [vmem:[%s1285_s6 + $0x58] sm:$0xf0]  ;;  %v794_v16 = vor.u32 %v840_v13, %v793_v12  ;;  %v785_v18 = vld [vmem:[%s1285_s6 + $0x40] sm:$0xf]  ;;  %v838_v19 = vld [vmem:[%s1285_s6 + $0x44] sm:$0xf0] }
  0x35   : > { %v798_v17 = vor.u32 %v839_v14, %v795_v15  ;;  %v837_v20 = vld [vmem:[%s1285_s6 + $0x44] sm:$0xf]  ;;  %v787_v21 = vld [vmem:[%s1285_s6 + $0x48] sm:$0xf0]  ;;  %v786_v22 = vor.u32 %v838_v19, %v785_v18  ;;  %v777_v24 = vld [vmem:[%s1285_s6 + $0x30] sm:$0xf] }
  0x36   : > { %v790_v23 = vor.u32 %v837_v20, %v787_v21  ;;  %v836_v25 = vld [vmem:[%s1285_s6 + $0x34] sm:$0xf0]  ;;  %v835_v26 = vld [vmem:[%s1285_s6 + $0x34] sm:$0xf]  ;;  %v779_v27 = vld [vmem:[%s1285_s6 + $0x38] sm:$0xf0] }
  0x37   : > { %438 = vmatpush.bf16.msra.mxu0 %v802_v10  ;;  %847 = vmatpush.bf16.msra.mxu2 %v802_v10  ;;  %v778_v28 = vor.u32 %v836_v25, %v777_v24  ;;  %v782_v29 = vor.u32 %v835_v26, %v779_v27  ;;  %v769_v30 = vld [vmem:[%s1285_s6 + $0x20] sm:$0xf]  ;;  %v834_v31 = vld [vmem:[%s1285_s6 + $0x24] sm:$0xf0]  ;;  %v833_v32 = vld [vmem:[%s1285_s6 + $0x24] sm:$0xf] }
  0x38   : > { %487 = vmatpush.bf16.msra.mxu1 %v806_v11  ;;  %855 = vmatpush.bf16.msra.mxu3 %v806_v11  ;;  %v771_v33 = vld [vmem:[%s1285_s6 + $0x28] sm:$0xf0]  ;;  %v770_v34 = vor.u32 %v834_v31, %v769_v30  ;;  %v761_v36 = vld [vmem:[%s1285_s6 + $0x10] sm:$0xf]  ;;  %v832_v37 = vld [vmem:[%s1285_s6 + $0x14] sm:$0xf0] }
  0x39   : > { %v774_v35 = vor.u32 %v833_v32, %v771_v33  ;;  %v831_v38 = vld [vmem:[%s1285_s6 + $0x14] sm:$0xf]  ;;  %v763_v39 = vld [vmem:[%s1285_s6 + $0x18] sm:$0xf0]  ;;  %v762_v40 = vor.u32 %v832_v37, %v761_v36  ;;  %v753_v42 = vld [vmem:[%s1285_s6] sm:$0xf] }
  0x3a   : > { %v766_v41 = vor.u32 %v831_v38, %v763_v39  ;;  %v830_v43 = vld [vmem:[%s1285_s6 + $0x4] sm:$0xf0]  ;;  %v829_v44 = vld [vmem:[%s1285_s6 + $0x4] sm:$0xf]  ;;  %v755_v45 = vld [vmem:[%s1285_s6 + $0x8] sm:$0xf0] }
  0x3b   : > { %439 = vmatpush.bf16.msra.mxu0 %v794_v16  ;;  %848 = vmatpush.bf16.msra.mxu2 %v794_v16  ;;  %v754_v46 = vor.u32 %v830_v43, %v753_v42  ;;  %v758_v47 = vor.u32 %v829_v44, %v755_v45  ;;  %v821_v48 = vld [vmem:[#allocation2] sm:$0xff]  ;;  %v822_v50 = vld [vmem:[#allocation2 + $0x8] sm:$0xff]  ;;  %v823_v52 = vld [vmem:[#allocation2 + $0x10] sm:$0xff]  ;;  %s237_s7 = scalar_lea.vmem [#allocation7], %s717_s1  ;;  %s718_s11 = sshll.u32 %s1282_s29, 8 }
  0x3c   : > { %488 = vmatpush.bf16.msra.mxu1 %v798_v17  ;;  %856 = vmatpush.bf16.msra.mxu3 %v798_v17  ;;  %v825_v49 = vld [vmem:[#allocation2 + $0x20] sm:$0xff]  ;;  %v826_v51 = vld [vmem:[#allocation2 + $0x28] sm:$0xff]  ;;  %v827_v53 = vld [vmem:[#allocation2 + $0x30] sm:$0xff]  ;;  %s1331_s20 = scalar_lea.vmem [#allocation8], %s718_s11  ;;  %s845_s28 = sshll.u32 %s1116_s15, 4 }
  0x3d   : > { %v824_v54 = vld [vmem:[#allocation2 + $0x18] sm:$0xff]  ;;  %v303_v56 = vld [vmem:[%s237_s7] sm:$0x3]  ;;  %s582_s5 = scalar_lea.hbm %s1437_s3, %s845_s28  ;;  %s583_s15 = sshll.u32 %s1331_s20, 4  ;;  %s584_s15 = int_to_ptr.vmem [resolvable:$true] %s583_s15 }
  0x3e   : > { %v828_v55 = vld [vmem:[#allocation2 + $0x38] sm:$0xff]  ;;  %v1325_v57 = vperm.slane %v303_v56, 0  ;;  %v1327_v58 = vperm.slane %v303_v56, 1  ;;  %s585_s8 = sshll.u32 %s582_s5, 4  ;;  %s568_s9 = scalar_lea.sflag [#allocation4], %s1282_s29  ;;  %s586_s8 = int_to_ptr.hbm [resolvable:$true] %s585_s8 }
  0x3f   : > { %440 = vmatpush.bf16.msra.mxu0 %v786_v22  ;;  %849 = vmatpush.bf16.msra.mxu2 %v786_v22  ;;  %s1052_s10 = sshra.s32 %s586_s8, 4  ;;  %s1058_s23 = scalar_lea.hbm %s1437_s3, 512  ;;  %s1053_s10 = int_to_ptr.hbm [resolvable:$true] %s1052_s10 }
  0x40   : > { %489 = vmatpush.bf16.msra.mxu1 %v790_v23  ;;  %857 = vmatpush.bf16.msra.mxu3 %v790_v23  ;;  %s1054_s19 = scalar_lea.hbm %s1053_s10, 256  ;;  %p1059_p10 = scmp.lt.s32.totalorder %s1053_s10, %s1437_s3 }
  0x41   : > { %p1055_p7 = scmp.ne.s32.totalorder %s1053_s10, %s1054_s19  ;;  %p1060_p11 = scmp.lt.s32.totalorder %s1058_s23, %s1054_s19 }
  0x43   : > { %441 = vmatpush.bf16.msra.mxu0 %v778_v28  ;;  %850 = vmatpush.bf16.msra.mxu2 %v778_v28  ;;  %p1056_p8 = pnand %p1055_p7, %p1245_p0  ;;  %p1061_p12 = por %p1060_p11, %p1059_p10 }
  0x44   : > { %490 = vmatpush.bf16.msra.mxu1 %v782_v29  ;;  %858 = vmatpush.bf16.msra.mxu3 %v782_v29 }
  0x45   : > { %p1057_p9 = pneg %p1056_p8 }
  0x47   : > { %442 = vmatpush.bf16.msra.mxu0 %v770_v34  ;;  %851 = vmatpush.bf16.msra.mxu2 %v770_v34  ;;  %p1062_p13 = pnand %p1061_p12, %p1057_p9 }
  0x48   : > { %491 = vmatpush.bf16.msra.mxu1 %v774_v35  ;;  %859 = vmatpush.bf16.msra.mxu3 %v774_v35 }
  0x4b   : > { %443 = vmatpush.bf16.msra.mxu0 %v762_v40  ;;  %852 = vmatpush.bf16.msra.mxu2 %v762_v40 }
  0x4c   : > { %492 = vmatpush.bf16.msra.mxu1 %v766_v41  ;;  %860 = vmatpush.bf16.msra.mxu3 %v766_v41 }
  0x4f   : > { %444 = vmatpush.bf16.msra.mxu0 %v754_v46  ;;  %853 = vmatpush.bf16.msra.mxu2 %v754_v46 }
  0x50   : > { %493 = vmatpush.bf16.msra.mxu1 %v758_v47  ;;  %861 = vmatpush.bf16.msra.mxu3 %v758_v47 }
  0x52   : > { %445 = vmatmul.bf16.vlgmr.msra.gmra.mxu0 %v821_v48  ;;  %465 = vmatmul.bf16.vlgmr.msra.gmra.mxu2 %v825_v49 }
  0x53   : > { %494 = vmatmul.bf16.vlgmr.msra.gmra.mxu1 %v821_v48  ;;  %514 = vmatmul.bf16.vlgmr.msra.gmra.mxu3 %v825_v49 }
  0x62   : > { %450 = vmatmul.bf16.gmra.mxu0 %v822_v50  ;;  %470 = vmatmul.bf16.gmra.mxu2 %v826_v51 }
  0x63   : > { %499 = vmatmul.bf16.gmra.mxu1 %v822_v50  ;;  %519 = vmatmul.bf16.gmra.mxu3 %v826_v51 }
  0x72   : > { %455 = vmatmul.bf16.gmra.mxu0 %v823_v52  ;;  %475 = vmatmul.bf16.gmra.mxu2 %v827_v53 }
  0x73   : > { %504 = vmatmul.bf16.gmra.mxu1 %v823_v52  ;;  %524 = vmatmul.bf16.gmra.mxu3 %v827_v53 }
  0x82   : > { %460 = vmatmul.bf16.gmra.mxu0 %v824_v54  ;;  %480 = vmatmul.bf16.gmra.mxu2 %v828_v55 }
  0x83   : > { %509 = vmatmul.bf16.gmra.mxu1 %v824_v54  ;;  %529 = vmatmul.bf16.gmra.mxu3 %v828_v55 }
  0xcf   : > { %v446_v59 = vpop.f32.mrf.mxu0 }
  0xd0   : > { %v447_v60 = vadd.f32 %v446_v59, %v1325_v57  ;;  %v495_v61 = vpop.f32.mrf.mxu1 }
  0xd1   : > { %v496_v62 = vadd.f32 %v495_v61, %v1327_v58 }
  0xd2   : > { %535 = vst [vmem:[%s1331_s20] sm:$0xff] %v447_v60 }
  0xd3   : > { %536 = vst [vmem:[%s1331_s20 + $0x8] sm:$0xff] %v496_v62 }
  0xd5   : > { %v466_v63 = vpop.f32.mrf.mxu2 }
  0xd6   : > { %v467_v0 = vadd.f32 %v466_v63, %v1325_v57  ;;  %v515_v1 = vpop.f32.mrf.mxu3 }
  0xd7   : > { %v516_v2 = vadd.f32 %v515_v1, %v1327_v58  ;;  %v448_v3 = vpop.f32.mrf.mxu0 }
  0xd8   : > { %551 = vst [vmem:[%s1331_s20 + $0x80] sm:$0xff] %v467_v0  ;;  %v449_v4 = vadd.f32 %v448_v3, %v1325_v57  ;;  %v497_v5 = vpop.f32.mrf.mxu1 }
  0xd9   : > { %552 = vst [vmem:[%s1331_s20 + $0x88] sm:$0xff] %v516_v2  ;;  %v498_v6 = vadd.f32 %v497_v5, %v1327_v58 }
  0xda   : > { %537 = vst [vmem:[%s1331_s20 + $0x10] sm:$0xff] %v449_v4 }
  0xdb   : > { %538 = vst [vmem:[%s1331_s20 + $0x18] sm:$0xff] %v498_v6 }
  0xdd   : > { %v468_v7 = vpop.f32.mrf.mxu2 }
  0xde   : > { %v469_v8 = vadd.f32 %v468_v7, %v1325_v57  ;;  %v517_v9 = vpop.f32.mrf.mxu3 }
  0xdf   : > { %v518_v10 = vadd.f32 %v517_v9, %v1327_v58  ;;  %v451_v11 = vpop.f32.mrf.mxu0 }
  0xe0   : > { %553 = vst [vmem:[%s1331_s20 + $0x90] sm:$0xff] %v469_v8  ;;  %v452_v12 = vadd.f32 %v451_v11, %v1325_v57  ;;  %v500_v13 = vpop.f32.mrf.mxu1 }
  0xe1   : > { %554 = vst [vmem:[%s1331_s20 + $0x98] sm:$0xff] %v518_v10  ;;  %v501_v14 = vadd.f32 %v500_v13, %v1327_v58 }
  0xe2   : > { %539 = vst [vmem:[%s1331_s20 + $0x20] sm:$0xff] %v452_v12 }
  0xe3   : > { %540 = vst [vmem:[%s1331_s20 + $0x28] sm:$0xff] %v501_v14 }
  0xe5   : > { %v471_v15 = vpop.f32.mrf.mxu2 }
  0xe6   : > { %v472_v16 = vadd.f32 %v471_v15, %v1325_v57  ;;  %v520_v17 = vpop.f32.mrf.mxu3 }
  0xe7   : > { %v521_v18 = vadd.f32 %v520_v17, %v1327_v58  ;;  %v453_v19 = vpop.f32.mrf.mxu0 }
  0xe8   : > { %555 = vst [vmem:[%s1331_s20 + $0xa0] sm:$0xff] %v472_v16  ;;  %v454_v20 = vadd.f32 %v453_v19, %v1325_v57  ;;  %v502_v21 = vpop.f32.mrf.mxu1 }
  0xe9   : > { %556 = vst [vmem:[%s1331_s20 + $0xa8] sm:$0xff] %v521_v18  ;;  %v503_v22 = vadd.f32 %v502_v21, %v1327_v58 }
  0xea   : > { %541 = vst [vmem:[%s1331_s20 + $0x30] sm:$0xff] %v454_v20 }
  0xeb   : > { %542 = vst [vmem:[%s1331_s20 + $0x38] sm:$0xff] %v503_v22 }
  0xed   : > { %v473_v23 = vpop.f32.mrf.mxu2 }
  0xee   : > { %v474_v24 = vadd.f32 %v473_v23, %v1325_v57  ;;  %v522_v25 = vpop.f32.mrf.mxu3 }
  0xef   : > { %v523_v26 = vadd.f32 %v522_v25, %v1327_v58  ;;  %v456_v27 = vpop.f32.mrf.mxu0 }
  0xf0   : > { %557 = vst [vmem:[%s1331_s20 + $0xb0] sm:$0xff] %v474_v24  ;;  %v457_v28 = vadd.f32 %v456_v27, %v1325_v57  ;;  %v505_v29 = vpop.f32.mrf.mxu1 }
  0xf1   : > { %558 = vst [vmem:[%s1331_s20 + $0xb8] sm:$0xff] %v523_v26  ;;  %v506_v30 = vadd.f32 %v505_v29, %v1327_v58 }
  0xf2   : > { %543 = vst [vmem:[%s1331_s20 + $0x40] sm:$0xff] %v457_v28 }
  0xf3   : > { %544 = vst [vmem:[%s1331_s20 + $0x48] sm:$0xff] %v506_v30 }
  0xf5   : > { %v476_v31 = vpop.f32.mrf.mxu2 }
  0xf6   : > { %v477_v32 = vadd.f32 %v476_v31, %v1325_v57  ;;  %v525_v33 = vpop.f32.mrf.mxu3 }
  0xf7   : > { %v526_v34 = vadd.f32 %v525_v33, %v1327_v58  ;;  %v458_v35 = vpop.f32.mrf.mxu0 }
  0xf8   : > { %559 = vst [vmem:[%s1331_s20 + $0xc0] sm:$0xff] %v477_v32  ;;  %v459_v36 = vadd.f32 %v458_v35, %v1325_v57  ;;  %v507_v37 = vpop.f32.mrf.mxu1 }
  0xf9   : > { %560 = vst [vmem:[%s1331_s20 + $0xc8] sm:$0xff] %v526_v34  ;;  %v508_v38 = vadd.f32 %v507_v37, %v1327_v58 }
  0xfa   : > { %545 = vst [vmem:[%s1331_s20 + $0x50] sm:$0xff] %v459_v36 }
  0xfb   : > { %546 = vst [vmem:[%s1331_s20 + $0x58] sm:$0xff] %v508_v38 }
  0xfd   : > { %v478_v39 = vpop.f32.mrf.mxu2 }
  0xfe   : > { %v479_v40 = vadd.f32 %v478_v39, %v1325_v57  ;;  %v527_v41 = vpop.f32.mrf.mxu3 }
  0xff   : > { %v528_v42 = vadd.f32 %v527_v41, %v1327_v58  ;;  %v461_v43 = vpop.f32.mrf.mxu0 }
 0x100   : > { %561 = vst [vmem:[%s1331_s20 + $0xd0] sm:$0xff] %v479_v40  ;;  %v462_v44 = vadd.f32 %v461_v43, %v1325_v57  ;;  %v510_v45 = vpop.f32.mrf.mxu1 }
 0x101   : > { %562 = vst [vmem:[%s1331_s20 + $0xd8] sm:$0xff] %v528_v42  ;;  %v511_v46 = vadd.f32 %v510_v45, %v1327_v58 }
 0x102   : > { %547 = vst [vmem:[%s1331_s20 + $0x60] sm:$0xff] %v462_v44 }
 0x103   : > { %548 = vst [vmem:[%s1331_s20 + $0x68] sm:$0xff] %v511_v46 }
 0x105   : > { %v481_v47 = vpop.f32.mrf.mxu2 }
 0x106   : > { %v482_v48 = vadd.f32 %v481_v47, %v1325_v57  ;;  %v530_v49 = vpop.f32.mrf.mxu3 }
 0x107   : > { %v531_v50 = vadd.f32 %v530_v49, %v1327_v58  ;;  %v463_v51 = vpop.f32.mrf.mxu0 }
 0x108   : > { %563 = vst [vmem:[%s1331_s20 + $0xe0] sm:$0xff] %v482_v48  ;;  %v464_v52 = vadd.f32 %v463_v51, %v1325_v57  ;;  %v512_v53 = vpop.f32.mrf.mxu1 }
 0x109   : > { %564 = vst [vmem:[%s1331_s20 + $0xe8] sm:$0xff] %v531_v50  ;;  %v513_v54 = vadd.f32 %v512_v53, %v1327_v58 }
 0x10a   : > { %549 = vst [vmem:[%s1331_s20 + $0x70] sm:$0xff] %v464_v52 }
 0x10b   : > { %550 = vst [vmem:[%s1331_s20 + $0x78] sm:$0xff] %v513_v54 }
 0x10d   : > { %v483_v55 = vpop.f32.mrf.mxu2 }
 0x10e   : > { %v484_v56 = vadd.f32 %v483_v55, %v1325_v57  ;;  %v532_v59 = vpop.f32.mrf.mxu3 }
 0x10f   : > { %v533_v60 = vadd.f32 %v532_v59, %v1327_v58 }
 0x110   : > { %565 = vst [vmem:[%s1331_s20 + $0xf0] sm:$0xff] %v484_v56 }
 0x111   : > { %566 = vst [vmem:[%s1331_s20 + $0xf8] sm:$0xff] %v533_v60 }
 0x112   : > { %1065 = shalt.err (!%p1062_p13)
}
 0x113   : > { %s1132_s29 = smov 256   ;;  %s1133_s6 = smov 512  }
 0x114   : > { %s1134_s1 = smov 16  }
 0x115   : > { %870 = dma.vmem_to_hbm [thread:$0]  (%p1245_p0), %s584_s15, 4096, %s586_s8, %s568_s9, %s1132_s29, %s1133_s6, %s1134_s1  }
 0x116 PF: > { %s600_s7 = sand.u32 1, %s1104_s12   ;;  %p884_p4 = pnand %p708_p3, %p1249_p2 }
 0x117   : > { %s601_s11 = scalar_lea.sflag [#allocation4], %s600_s7 }
 0x118   : > { %p885_p5 = pneg %p884_p4 }
 0x11a   : > { %1099 = dma.done.wait (%p885_p5), %s601_s11, 4096  }
 0x11b   : > { %1101 = vsyncadd (%p885_p5), %s601_s11, 4294963200  ;;  %s20_s17 = sadd.s32 1, %s1124_s17   ;;  %s1448_s12 = smov %s1108_s13 }
 0x11c   : > { %p17_p1 = scmp.ge.s32.totalorder %s20_s17, 4   ;;  %s1449_s13 = smov %s1112_s14 }
 0x11d   : > { %s1450_s14 = smov %s1207_s25  ;;  %s1451_s15 = smov %s1120_s16 }
 0x11e   : > { %s1452_s16 = smov %s1454_s18  ;;  %19 = sbr.rel (!%p17_p1) target bundleno = 10 (0xa), region = 94 }
 0x123   :  { %607 = vsyncpa [#allocation3], 1 }
 0x124   :  { %609 = vsyncpa [#allocation3 + $0x1], 1 }
 0x125   :  { %610 = vsyncpa [#allocation6], 1 }
 0x126   :  { %612 = vsyncpa [#allocation6 + $0x1], 1 }
 0x127   :  { %613 = vsyncpa [#allocation4], 1 }
 0x128   :  { %615 = vsyncpa [#allocation4 + $0x1], 1 }

</bundles_post_ra>
